<compile_context>
chip_gen: v7x
topology: tpu7x:2x2x1
jax: 0.10.0
libtpu: 0.0.40
codegen_flags: <defaults>
</compile_context>

<pallas_src>
import functools

import jax
import jax.numpy as jnp
from jax.experimental import pallas as pl
from jax.experimental.pallas import tpu as pltpu

LANES = 128
SUBLANES = 8
TARGET_TILE_BYTES = 8 * 1024 * 1024    # ~8 MiB input tile (double-buffered 16 MiB)
GROUP_ROWS = 512                        # chunk size for the in-kernel fold


def _sn_gen_loss_kernel(x_ref, o_ref, *, block_rows, group_rows,
                        blocks_per_split, total_blocks, valid_last, mask_last):
    """Accumulate an (8, 128) f32 partial sum per parallel split."""
    p = pl.program_id(0)          # parallel split (maps across TCs when used)
    j = pl.program_id(1)          # reduction steps within the split

    @pl.when(j == 0)
    def _():
        o_ref[...] = jnp.zeros_like(o_ref)

    def fold(valid_rows):
        # Fold `valid_rows` rows of the tile into an (8,128) f32 partial using
        # small chunks: only chunk-sized temporaries live in VMEM, and the
        # upcast happens on-chip (important for bf16 inputs).
        partial = jnp.zeros((SUBLANES, LANES), jnp.float32)
        n_full = valid_rows // group_rows
        for g in range(n_full):
            chunk = x_ref[pl.ds(g * group_rows, group_rows), :].astype(jnp.float32)
            partial = partial + chunk.reshape(-1, SUBLANES, LANES).sum(axis=0)
        rem = valid_rows - n_full * group_rows        # multiple of 8
        if rem:
            chunk = x_ref[pl.ds(n_full * group_rows, rem), :].astype(jnp.float32)
            partial = partial + chunk.reshape(-1, SUBLANES, LANES).sum(axis=0)
        return partial

    if mask_last:
        # Only the genuinely ragged last block pays for the partial read; all
        # other steps stream the raw tile (no iota, no where, no extra copy).
        blk = p * blocks_per_split + j
        is_last = blk == (total_blocks - 1)

        @pl.when(jnp.logical_not(is_last))
        def _():
            o_ref[...] += fold(block_rows)

        @pl.when(is_last)
        def _():
            o_ref[...] += fold(valid_last)
    else:
        o_ref[...] += fold(block_rows)


def sn_gen_loss(neg, weight=1.0, *, target_tile_bytes=TARGET_TILE_BYTES,
                num_splits=1):
    """-weight * mean(neg) via a Pallas TPU streaming reduction."""
    count = neg.size
    flat = jnp.ravel(neg)                              # native dtype on the wire

    unit = SUBLANES * LANES                            # 1024 elements
    main_len = (count // unit) * unit

    if main_len == 0:
        # Tiny input: zero-pad up to one (8,128) tile (zeros are benign for a sum).
        flat_main = jnp.pad(flat, (0, unit - count))
        tail_sum = jnp.float32(0.0)
        main_len = unit
    elif main_len < count:
        # Ragged tail (<1024 elements): sum in plain JAX, no full-array pad copy.
        flat_main = flat[:main_len]
        tail_sum = jnp.sum(flat[main_len:].astype(jnp.float32))
    else:
        flat_main = flat                               # exact multiple: no copy
        tail_sum = jnp.float32(0.0)

    total_rows = main_len // LANES                     # multiple of 8
    x2d = flat_main.reshape(total_rows, LANES)

    # ---- tile sizing: by bytes, dtype-aware -------------------------------
    itemsize = jnp.dtype(x2d.dtype).itemsize
    block_rows = max(SUBLANES, target_tile_bytes // (LANES * itemsize))
    block_rows -= block_rows % SUBLANES
    block_rows = min(block_rows, total_rows)           # (multiple of 8 either way)

    total_blocks = -(-total_rows // block_rows)        # ceil div (python int)
    num_splits = max(1, min(int(num_splits), total_blocks))
    if total_blocks % num_splits != 0:
        # Never emit a clamped duplicate-block DMA (wasted full-tile HBM read).
        num_splits = 1
    blocks_per_split = total_blocks // num_splits

    mask_last = (total_blocks * block_rows) != total_rows
    valid_last = total_rows - (total_blocks - 1) * block_rows
    group_rows = min(GROUP_ROWS, block_rows)

    kernel = functools.partial(
        _sn_gen_loss_kernel,
        block_rows=block_rows,
        group_rows=group_rows,
        blocks_per_split=blocks_per_split,
        total_blocks=total_blocks,
        valid_last=valid_last,
        mask_last=mask_last,
    )

    partials = pl.pallas_call(
        kernel,
        out_shape=jax.ShapeDtypeStruct((num_splits * SUBLANES, LANES), jnp.float32),
        grid_spec=pltpu.PrefetchScalarGridSpec(
            num_scalar_prefetch=0,
            grid=(num_splits, blocks_per_split),
            in_specs=[pl.BlockSpec(
                (block_rows, LANES),
                lambda p, j: (p * blocks_per_split + j, 0))],
            # One (8,128) partial-sum block per split; the same block is
            # revisited across j, so it acts as the accumulator.
            out_specs=pl.BlockSpec((SUBLANES, LANES), lambda p, j: (p, 0)),
        ),
        compiler_params=pltpu.CompilerParams(
            dimension_semantics=("parallel", "arbitrary"),
            vmem_limit_bytes=32 * 1024 * 1024),
    )(x2d)

    total = jnp.sum(partials) + tail_sum
    return (-jnp.float32(weight)) * total / jnp.float32(count)


if __name__ == "__main__":
    key = jax.random.PRNGKey(0)
    # "neg" = discriminator scores on generated samples, NCHW-like.
    neg = jax.random.normal(key, (2, 4, 16, 16), dtype=jnp.float32)

    weight = 1.0
    loss = sn_gen_loss(neg, weight=weight)
    loss = jax.block_until_ready(loss)

    # Reference check (plain JAX).
    ref = -weight * jnp.mean(neg)
    assert jnp.allclose(loss, ref, atol=1e-5, rtol=1e-5), (loss, ref)

    print("KERNEL_OK")
</pallas_src>

<mosaic_0001>
module attributes {stable_mosaic.version = 11 : i64} {
  func.func @_sn_gen_loss_kernel(%arg0: i32, %arg1: i32, %arg2: memref<16x128xf32, #tpu.memory_space<vmem>>, %arg3: memref<8x128xf32, #tpu.memory_space<vmem>>) attributes {dimension_semantics = [#tpu.dimension_semantics<parallel>, #tpu.dimension_semantics<arbitrary>], iteration_bounds = array<i64: 1, 1>, scalar_prefetch = 0 : i64, scratch_operands = 0 : i64, tpu.core_type = #tpu.core_type<tc>, window_params = [{transform_indices = @transform_0, window_bounds = array<i64: 16, 128>}, {transform_indices = @transform_1, window_bounds = array<i64: 8, 128>}]} {
    %c0_i32 = arith.constant 0 : i32
    %0 = arith.cmpi eq, %arg1, %c0_i32 : i32
    %1 = arith.extui %0 : i1 to i32
    %c0_i32_0 = arith.constant 0 : i32
    %2 = arith.cmpi ne, %1, %c0_i32_0 : i32
    scf.if %2 {
      %cst_7 = arith.constant 0.000000e+00 : f32
      %11 = vector.broadcast %cst_7 : f32 to vector<8x128xf32>
      %c0_8 = arith.constant 0 : index
      %c0_9 = arith.constant 0 : index
      %12 = vector.load %arg3[%c0_8, %c0_9] : memref<8x128xf32, #tpu.memory_space<vmem>>, vector<8x128xf32>
      tpu.vector_store %arg3[%c0_8, %c0_9], %11 {strides = array<i32>} : memref<8x128xf32, #tpu.memory_space<vmem>>, vector<8x128xf32>,
    } else {
    }
    %c0 = arith.constant 0 : index
    %c0_1 = arith.constant 0 : index
    %3 = vector.load %arg3[%c0, %c0_1] : memref<8x128xf32, #tpu.memory_space<vmem>>, vector<8x128xf32>
    %cst = arith.constant 0.000000e+00 : f32
    %4 = vector.broadcast %cst : f32 to vector<8x128xf32>
    %c0_2 = arith.constant 0 : index
    %c0_3 = arith.constant 0 : index
    %5 = vector.load %arg2[%c0_2, %c0_3] : memref<16x128xf32, #tpu.memory_space<vmem>>, vector<16x128xf32>
    %6 = vector.shape_cast %5 : vector<16x128xf32> to vector<2x8x128xf32>
    %cst_4 = arith.constant dense<0.000000e+00> : vector<8x128xf32>
    %7 = vector.multi_reduction <add>, %6, %cst_4 [0] : vector<2x8x128xf32> to vector<8x128xf32>
    %8 = arith.addf %4, %7 : vector<8x128xf32>
    %9 = arith.addf %3, %8 : vector<8x128xf32>
    %c0_5 = arith.constant 0 : index
    %c0_6 = arith.constant 0 : index
    %10 = vector.load %arg3[%c0_5, %c0_6] : memref<8x128xf32, #tpu.memory_space<vmem>>, vector<8x128xf32>
    tpu.vector_store %arg3[%c0_5, %c0_6], %9 {strides = array<i32>} : memref<8x128xf32, #tpu.memory_space<vmem>>, vector<8x128xf32>,
    return
  }
  func.func @transform_0(%arg0: i32, %arg1: i32) -> (i32, i32) {
    %c1_i32 = arith.constant 1 : i32
    %0 = arith.muli %arg0, %c1_i32 : i32
    %1 = arith.addi %0, %arg1 : i32
    %c0_i32 = arith.constant 0 : i32
    %c0_i32_0 = arith.constant 0 : i32
    return %1, %c0_i32 : i32, i32
  }
  func.func @transform_1(%arg0: i32, %arg1: i32) -> (i32, i32) {
    %c0_i32 = arith.constant 0 : i32
    %c0_i32_0 = arith.constant 0 : i32
    return %arg0, %c0_i32 : i32, i32
  }
}

</mosaic_0001>

<bundles_post_ra>
// kernel: tpu_custom_call.1
= control target key start
LH: loop header
LB: loop body
LE: loop exit
PB: predicated region body
PF: predicated region fallthrough
CT: control target
= control target key end

     0   :  { %6 = vsyncpa [#allocation3], 0  ;;  %s147_s0 = inlined_call_operand.hbm [shape: f32[16,128], index: 0, kind: input, shape index: {}]   ;;  %s148_s1 = inlined_call_operand.hbm [shape: f32[8,128], index: 1, kind: output, shape index: {}]  }
   0x1   :  { %7 = vsyncpa [#allocation4], 0  ;;  %s109_s6 = smov [#allocation2]   ;;  %s61_s10 = scalar_lea.hbm %s147_s0, 256 }
   0x2   :  { %s17_s7 = sshll.u32 %s109_s6, 4  ;;  %p62_p0 = scmp.ne.s32.totalorder %s147_s0, %s61_s10  ;;  %s18_s7 = int_to_ptr.vmem [resolvable:$true] %s17_s7 }
   0x3   :  { %p65_p1 = scmp.lt.u32.totalorder %s61_s10, %s147_s0 }
   0x5   :  { %p67_p2 = pnand %p65_p1, %p62_p0 }
   0x7   :  { %70 = shalt.err (!%p67_p2)
}
   0x8   :  { %s71_s15 = scalar_lea.vmem %s18_s7, 256  ;;  %p76_p4 = scmp.lt.s32.totalorder %s18_s7, %s18_s7 }
   0x9   :  { %p72_p3 = scmp.ne.s32.totalorder %s18_s7, %s71_s15  ;;  %p77_p5 = scmp.lt.s32.totalorder %s71_s15, %s71_s15 }
   0xb   :  { %p78_p6 = por %p77_p5, %p76_p4 }
   0xd   :  { %p79_p7 = pnand %p78_p6, %p72_p3 }
   0xf   :  { %82 = shalt.err (!%p79_p7)
}
  0x10   :  { %s110_s16 = smov 128   ;;  %s111_s17 = smov 8  }
  0x11   :  { %23 = dma.hbm_to_vmem [thread:$0]  %s147_s0, 256, %s18_s7, [#allocation3], %s110_s16, %s110_s16, %s111_s17  }
  0x12   :  { %105 = dma.done.wait [#allocation3], 256  }
  0x13   :  { %106 = vsyncadd [#allocation3], 4294967040  ;;  %v35_v0 = vld [vmem:[#allocation2] sm:$0xff]  ;;  %v36_v1 = vld [vmem:[#allocation2 + $0x8] sm:$0xff]  ;;  %s112_s20 = smov [#allocation5]  }
  0x14   :  { %s47_s21 = sshll.u32 %s112_s20, 4  ;;  %v37_v2 = vadd.f32 %v36_v1, %v35_v0  ;;  %s48_s21 = int_to_ptr.vmem [resolvable:$true] %s47_s21 }
  0x15   :  { %s83_s22 = scalar_lea.vmem %s48_s21, 128  ;;  %p88_p9 = scmp.lt.s32.totalorder %s48_s21, %s48_s21 }
  0x16   :  { %40 = vst [vmem:[#allocation5] sm:$0xff] %v37_v2  ;;  %p84_p8 = scmp.ne.s32.totalorder %s48_s21, %s83_s22  ;;  %p89_p10 = scmp.lt.s32.totalorder %s83_s22, %s83_s22 }
  0x18   :  { %p90_p11 = por %p89_p10, %p88_p9 }
  0x1a   :  { %p91_p12 = pnand %p90_p11, %p84_p8 }
  0x1c   :  { %94 = shalt.err (!%p91_p12)
}
  0x1d   :  { %s95_s0 = scalar_lea.hbm %s148_s1, 128 }
  0x1e   :  { %p96_p13 = scmp.ne.s32.totalorder %s148_s1, %s95_s0  ;;  %p99_p0 = scmp.lt.u32.totalorder %s95_s0, %s148_s1 }
  0x20   :  { %p101_p1 = pnand %p99_p0, %p96_p13 }
  0x22   :  { %104 = shalt.err (!%p101_p1)
}
  0x23   :  { %50 = dma.vmem_to_hbm [thread:$0]  %s48_s21, 128, %s148_s1, [#allocation4]  }
  0x24   :  { %107 = dma.done.wait [#allocation4], 128  }
  0x25   :  { %108 = vsyncadd [#allocation4], 4294967168 }
  0x26   :  { %54 = vsyncpa [#allocation3], 1 }
  0x27   :  { %55 = vsyncpa [#allocation4], 1 }

</bundles_post_ra>
